<compile_context>
chip_gen: v7x
topology: tpu7x:2x2x1
jax: 0.10.0
libtpu: 0.0.40
codegen_flags: <defaults>
</compile_context>

<pallas_src>
import math

import jax
import jax.numpy as jnp
from jax.experimental import pallas as pl
from jax.experimental.pallas import tpu as pltpu


def make_sinusoidal_pe(context_len: int, d_model: int) -> jnp.ndarray:
    """Deterministic parameter setup, matches the PyTorch __init__ (even d_model)."""
    position = jnp.arange(context_len, dtype=jnp.float32)[:, None]            # [L, 1]
    div_term = jnp.exp(
        jnp.arange(0, d_model, 2, dtype=jnp.float32) * (-math.log(10000.0) / d_model)
    )                                                                          # [D/2]
    pe = jnp.zeros((context_len, d_model), dtype=jnp.float32)
    pe = pe.at[:, 0::2].set(jnp.sin(position * div_term))
    pe = pe.at[:, 1::2].set(jnp.cos(position * div_term))
    return pe


def _round_up(a: int, b: int) -> int:
    return (a + b - 1) // b * b


def _cdiv(a: int, b: int) -> int:
    return -(-a // b)


def _vmem_capacity_bytes() -> int:
    """Physical VMEM of the attached TPU; conservative v7x floor if unknown."""
    try:
        cap = getattr(pltpu.get_tpu_info(), "vmem_capacity_bytes", None)
        if cap:
            return int(cap)
    except Exception:
        pass
    return 64 << 20


# --------------------------------------------------------------------------- #
# Kernel 1: one-hot MXU gather (small / moderate context_len).
# --------------------------------------------------------------------------- #
def _onehot_gather_kernel(idx_ref, pe3_ref, out_ref):
    # idx_ref: (R, K) int32        — pre-offset indices (idx + k*ctx) of the K
    #                                logical rows packed into each output row.
    # pe3_ref: (3, K*ctx, K*d) bf16 — block-diagonal table, exact 3-term bf16
    #                                split of the f32 pe, VMEM-resident.
    # out_ref: (R, K*d) f32        — lane-dense output block.
    rows, K = idx_ref.shape
    _, kctx, kd = pe3_ref.shape

    idx = idx_ref[...]                                                 # (R, K)
    col = jax.lax.broadcasted_iota(jnp.int32, (rows, kctx), 1)         # (R, K*ctx)
    oh = col == idx[:, 0:1]
    for k in range(1, K):                                              # K static & small
        oh = oh | (col == idx[:, k:k + 1])
    oh = oh.astype(jnp.bfloat16)                                       # exact 0/1 in bf16

    # Three single-pass bf16 MXU dots accumulated in f32.  Each term is an exact
    # row gather (one nonzero product per lane group of the block-diag RHS), so
    # hi + mid + lo reproduces the f32 table to ~1e-7.
    acc = jnp.dot(oh, pe3_ref[0], preferred_element_type=jnp.float32)
    acc = acc + jnp.dot(oh, pe3_ref[1], preferred_element_type=jnp.float32)
    acc = acc + jnp.dot(oh, pe3_ref[2], preferred_element_type=jnp.float32)
    out_ref[...] = acc.astype(out_ref.dtype)


# --------------------------------------------------------------------------- #
# Kernel 2: per-row dynamic copy (large context_len) — ld/st bound, no MXU.
# --------------------------------------------------------------------------- #
def _copy_gather_kernel(idx_ref, pe_ref, out_ref):
    # idx_ref: SMEM (n_pad,) int32 — scalar-prefetched, whole padded index vector.
    # pe_ref : VMEM (ctx, d) f32   — resident table (constant index_map).
    # out_ref: VMEM (R, d) f32     — output row block for this grid step.
    rows = out_ref.shape[0]
    base = pl.program_id(0) * rows

    def body(r, carry):
        i = idx_ref[base + r]                                  # SMEM scalar read
        out_ref[pl.ds(r, 1), :] = pe_ref[pl.ds(i, 1), :]       # dynamic row copy
        return carry

    jax.lax.fori_loop(0, rows, body, 0, unroll=8)


# --------------------------------------------------------------------------- #
# Module-like wrapper (preprocessing cached in __init__, like register_buffer).
# --------------------------------------------------------------------------- #
class SinusoidalPositionalEmbedding:
    """Pallas-TPU equivalent of the torch module: __call__(x) == pe[x]."""

    def __init__(self, context_len: int, d_model: int, *,
                 rows_per_block: int = 512, copy_path_min_ctx: int = 256):
        self.ctx = int(context_len)
        self.d = int(d_model)
        self.rows_per_block = int(rows_per_block)
        self.pe = make_sinusoidal_pe(self.ctx, self.d)         # f32 (ctx, d) "buffer"

        # Large tables: per-row copy loop beats the ctx*d-MAC one-hot matmul
        # (crossover ~85 on v5e, ~170-340 on v6e/v7x; 256 is a safe default).
        self.use_copy_path = self.ctx >= int(copy_path_min_ctx)

        if self.use_copy_path:
            self.K = 1
            self.pe3 = None
        else:
            d = self.d
            K = 128 // d if (d < 128 and 128 % d == 0) else 1  # lane-packing factor
            self.K = K
            if K == 1:
                blk = self.pe
            else:
                blk = jnp.zeros((K * self.ctx, K * d), jnp.float32)
                for k in range(K):                              # block-diag RHS, once
                    blk = blk.at[k * self.ctx:(k + 1) * self.ctx,
                                 k * d:(k + 1) * d].set(self.pe)
            # Exact 3-term bf16 split: blk == hi + mid + lo (to f32 precision).
            hi = blk.astype(jnp.bfloat16)
            r1 = blk - hi.astype(jnp.float32)
            mid = r1.astype(jnp.bfloat16)
            lo = (r1 - mid.astype(jnp.float32)).astype(jnp.bfloat16)
            self.pe3 = jax.device_put(jnp.stack([hi, mid, lo], axis=0))  # (3,Kctx,Kd)

    # -- forward ------------------------------------------------------------ #
    def __call__(self, x):
        x = jnp.asarray(x)
        x_flat = x.reshape(-1)
        out = (self._forward_copy(x_flat) if self.use_copy_path
               else self._forward_onehot(x_flat))
        return out.reshape(tuple(x.shape) + (self.d,))

    # -- path A: block-diag one-hot MXU gather ------------------------------ #
    def _forward_onehot(self, x_flat):
        seq = int(x_flat.shape[0])
        ctx, d, K = self.ctx, self.d, self.K
        kctx, kd = K * ctx, K * d
        n_packed = max(1, _cdiv(seq, K))

        # Per-step VMEM: single-buffered table, double-buffered idx/out blocks,
        # (R, kctx) bf16 one-hot + i32 iota intermediates, f32 accumulator.
        def step_bytes(r):
            return (3 * kctx * kd * 2
                    + 2 * r * K * 4
                    + 2 * r * kd * 4
                    + r * kctx * (2 + 4)
                    + r * kd * 4)

        cap = _vmem_capacity_bytes()
        budget = (cap * 3) // 4
        # Grid >= 2 whenever possible so v7x can shard rows across both TCs.
        R = min(self.rows_per_block, _round_up(_cdiv(n_packed, 2), 8))
        R = max(8, _round_up(R, 8))
        while R > 8 and step_bytes(R) > budget:
            R = max(8, _round_up(R // 2, 8))

        n_pad = _round_up(n_packed, R)
        seq_pad = n_pad * K
        grid = n_pad // R
        vmem_limit = int(min(max(step_bytes(R) + (4 << 20), 32 << 20), cap))

        # Clamp (torch would raise on OOB), pad, pack, and pre-offset by k*ctx so
        # the one-hot directly addresses the block-diagonal table.
        xi = jnp.clip(x_flat.astype(jnp.int32), 0, ctx - 1)
        x_pad = jnp.zeros((seq_pad,), jnp.int32).at[:seq].set(xi)
        idx2d = (x_pad.reshape(n_pad, K)
                 + (jnp.arange(K, dtype=jnp.int32) * ctx)[None, :])

        def run(single_buffer_table: bool):
            pe_kw = {"pipeline_mode": pl.Buffered(1)} if single_buffer_table else {}
            return pl.pallas_call(
                _onehot_gather_kernel,
                out_shape=jax.ShapeDtypeStruct((n_pad, kd), jnp.float32),
                grid=(grid,),
                in_specs=[
                    pl.BlockSpec((R, K), lambda i: (i, 0)),             # packed indices
                    pl.BlockSpec((3, kctx, kd), lambda i: (0, 0, 0),    # resident table
                                 **pe_kw),
                ],
                out_specs=pl.BlockSpec((R, kd), lambda i: (i, 0)),      # lane-dense out
                compiler_params=pltpu.CompilerParams(
                    dimension_semantics=("parallel",),   # rows independent -> 2 TCs v7x
                    vmem_limit_bytes=vmem_limit,
                ),
            )(idx2d, self.pe3)

        try:
            out = run(True)
        except Exception:            # pipeline_mode / Buffered(1) unsupported -> default
            out = run(False)
        # Un-pack the lane-dense slab (row-major reshape, pure layout plumbing).
        return out.reshape(seq_pad, d)[:seq]

    # -- path B: per-row copy loop (large ctx) ------------------------------ #
    def _forward_copy(self, x_flat):
        seq = int(x_flat.shape[0])
        ctx, d = self.ctx, self.d

        def step_bytes(r):
            return ctx * d * 4 + 2 * r * d * 4      # resident table + out block x2

        cap = _vmem_capacity_bytes()
        budget = (cap * 3) // 4
        R = min(self.rows_per_block, _round_up(_cdiv(max(1, seq), 2), 8))
        R = max(8, _round_up(R, 8))
        while R > 8 and step_bytes(R) > budget:
            R = max(8, _round_up(R // 2, 8))

        n_pad = _round_up(max(1, seq), R)
        grid = n_pad // R
        vmem_limit = int(min(max(step_bytes(R) + (4 << 20), 32 << 20), cap))

        xi = jnp.clip(x_flat.astype(jnp.int32), 0, ctx - 1)
        x_pad = jnp.zeros((n_pad,), jnp.int32).at[:seq].set(xi)

        def run(single_buffer_table: bool):
            pe_kw = {"pipeline_mode": pl.Buffered(1)} if single_buffer_table else {}
            return pl.pallas_call(
                _copy_gather_kernel,
                out_shape=jax.ShapeDtypeStruct((n_pad, d), jnp.float32),
                grid_spec=pltpu.PrefetchScalarGridSpec(
                    num_scalar_prefetch=1,               # idx vector -> SMEM
                    grid=(grid,),
                    in_specs=[pl.BlockSpec((ctx, d), lambda i, idx: (0, 0), **pe_kw)],
                    out_specs=pl.BlockSpec((R, d), lambda i, idx: (i, 0)),
                ),
                compiler_params=pltpu.CompilerParams(
                    dimension_semantics=("parallel",),
                    vmem_limit_bytes=vmem_limit,
                ),
            )(x_pad, self.pe)

        try:
            out = run(True)
        except Exception:
            out = run(False)
        return out[:seq]


if __name__ == "__main__":
    key = jax.random.PRNGKey(0)
    k1, k2, k3, k4 = jax.random.split(key, 4)

    # Case 1: packed lane-dense MXU path (context_len=16, d_model=32, seq=8).
    m1 = SinusoidalPositionalEmbedding(16, 32)
    x1 = jax.random.randint(k1, (8,), 0, 16, dtype=jnp.int32)
    out1 = jax.block_until_ready(m1(x1))
    assert out1.shape == (8, 32) and out1.dtype == jnp.float32
    assert jnp.allclose(out1, m1.pe[x1], atol=1e-5, rtol=1e-5), "case 1 mismatch"

    # Case 2: d_model >= 128 (K=1), ragged seq_len, grid split in two for megacore.
    m2 = SinusoidalPositionalEmbedding(32, 128)
    x2 = jax.random.randint(k2, (20,), 0, 32, dtype=jnp.int32)
    out2 = jax.block_until_ready(m2(x2))
    assert out2.shape == (20, 128)
    assert jnp.allclose(out2, m2.pe[x2], atol=1e-5, rtol=1e-5), "case 2 mismatch"

    # Case 3: force a multi-step grid on the packed MXU path.
    m3 = SinusoidalPositionalEmbedding(16, 32, rows_per_block=8)
    x3 = jax.random.randint(k3, (40,), 0, 16, dtype=jnp.int32)
    out3 = jax.block_until_ready(m3(x3))
    assert out3.shape == (40, 32)
    assert jnp.allclose(out3, m3.pe[x3], atol=1e-5, rtol=1e-5), "case 3 mismatch"

    # Case 4: large context_len -> per-row SMEM-indexed copy-loop path.
    m4 = SinusoidalPositionalEmbedding(512, 64)
    x4 = jax.random.randint(k4, (50,), 0, 512, dtype=jnp.int32)
    out4 = jax.block_until_ready(m4(x4))
    assert out4.shape == (50, 64)
    assert jnp.allclose(out4, m4.pe[x4], atol=1e-5, rtol=1e-5), "case 4 mismatch"

    print("KERNEL_OK")
</pallas_src>

<mosaic_0001>
module attributes {stable_mosaic.version = 11 : i64} {
  func.func @_onehot_gather_kernel(%arg0: i32, %arg1: memref<8x4xi32, #tpu.memory_space<vmem>>, %arg2: memref<3x64x128xbf16, #tpu.memory_space<vmem>>, %arg3: memref<8x128xf32, #tpu.memory_space<vmem>>) attributes {dimension_semantics = [#tpu.dimension_semantics<parallel>], iteration_bounds = array<i64: 1>, scalar_prefetch = 0 : i64, scratch_operands = 0 : i64, tpu.core_type = #tpu.core_type<tc>, window_params = [{transform_indices = @transform_0, window_bounds = array<i64: 8, 4>}, {pipeline_mode = #tpu.pipeline_mode<synchronous>, transform_indices = @transform_1, window_bounds = array<i64: 3, 64, 128>}, {transform_indices = @transform_2, window_bounds = array<i64: 8, 128>}]} {
    %c0 = arith.constant 0 : index
    %c0_0 = arith.constant 0 : index
    %0 = vector.load %arg1[%c0, %c0_0] : memref<8x4xi32, #tpu.memory_space<vmem>>, vector<8x4xi32>
    %1 = tpu.iota {dimensions = array<i32: 1>} : vector<8x64xi32>
    %2 = vector.extract_strided_slice %0 {offsets = [0, 0], sizes = [8, 1], strides = [1, 1]} : vector<8x4xi32> to vector<8x1xi32>
    %3 = vector.broadcast %2 : vector<8x1xi32> to vector<8x64xi32>
    %4 = arith.cmpi eq, %1, %3 : vector<8x64xi32>
    %5 = vector.extract_strided_slice %0 {offsets = [0, 1], sizes = [8, 1], strides = [1, 1]} : vector<8x4xi32> to vector<8x1xi32>
    %6 = vector.broadcast %5 : vector<8x1xi32> to vector<8x64xi32>
    %7 = arith.cmpi eq, %1, %6 : vector<8x64xi32>
    %8 = arith.ori %4, %7 : vector<8x64xi1>
    %9 = vector.extract_strided_slice %0 {offsets = [0, 2], sizes = [8, 1], strides = [1, 1]} : vector<8x4xi32> to vector<8x1xi32>
    %10 = vector.broadcast %9 : vector<8x1xi32> to vector<8x64xi32>
    %11 = arith.cmpi eq, %1, %10 : vector<8x64xi32>
    %12 = arith.ori %8, %11 : vector<8x64xi1>
    %13 = vector.extract_strided_slice %0 {offsets = [0, 3], sizes = [8, 1], strides = [1, 1]} : vector<8x4xi32> to vector<8x1xi32>
    %14 = vector.broadcast %13 : vector<8x1xi32> to vector<8x64xi32>
    %15 = arith.cmpi eq, %1, %14 : vector<8x64xi32>
    %16 = arith.ori %12, %15 : vector<8x64xi1>
    %17 = arith.extui %16 : vector<8x64xi1> to vector<8x64xi32>
    %18 = arith.sitofp %17 : vector<8x64xi32> to vector<8x64xf32>
    %19 = arith.truncf %18 : vector<8x64xf32> to vector<8x64xbf16>
    %c0_1 = arith.constant 0 : index
    %c0_2 = arith.constant 0 : index
    %c0_3 = arith.constant 0 : index
    %20 = vector.load %arg2[%c0_1, %c0_2, %c0_3] : memref<3x64x128xbf16, #tpu.memory_space<vmem>>, vector<1x64x128xbf16>
    %21 = vector.shape_cast %20 : vector<1x64x128xbf16> to vector<64x128xbf16>
    %cst = arith.constant dense<0.000000e+00> : vector<8x128xf32>
    %22 = tpu.matmul %19, %21, %cst {dimension_numbers = #tpu.dot_dimension_numbers<[1], [0], [0], [1], [0, 0, 1, 1], [], []>} : vector<8x64xbf16>, vector<64x128xbf16>, vector<8x128xf32> -> vector<8x128xf32>
    %c1 = arith.constant 1 : index
    %c0_4 = arith.constant 0 : index
    %c0_5 = arith.constant 0 : index
    %23 = vector.load %arg2[%c1, %c0_4, %c0_5] : memref<3x64x128xbf16, #tpu.memory_space<vmem>>, vector<1x64x128xbf16>
    %24 = vector.shape_cast %23 : vector<1x64x128xbf16> to vector<64x128xbf16>
    %cst_6 = arith.constant dense<0.000000e+00> : vector<8x128xf32>
    %25 = tpu.matmul %19, %24, %cst_6 {dimension_numbers = #tpu.dot_dimension_numbers<[1], [0], [0], [1], [0, 0, 1, 1], [], []>} : vector<8x64xbf16>, vector<64x128xbf16>, vector<8x128xf32> -> vector<8x128xf32>
    %26 = arith.addf %22, %25 : vector<8x128xf32>
    %c2 = arith.constant 2 : index
    %c0_7 = arith.constant 0 : index
    %c0_8 = arith.constant 0 : index
    %27 = vector.load %arg2[%c2, %c0_7, %c0_8] : memref<3x64x128xbf16, #tpu.memory_space<vmem>>, vector<1x64x128xbf16>
    %28 = vector.shape_cast %27 : vector<1x64x128xbf16> to vector<64x128xbf16>
    %cst_9 = arith.constant dense<0.000000e+00> : vector<8x128xf32>
    %29 = tpu.matmul %19, %28, %cst_9 {dimension_numbers = #tpu.dot_dimension_numbers<[1], [0], [0], [1], [0, 0, 1, 1], [], []>} : vector<8x64xbf16>, vector<64x128xbf16>, vector<8x128xf32> -> vector<8x128xf32>
    %30 = arith.addf %26, %29 : vector<8x128xf32>
    %c0_10 = arith.constant 0 : index
    %c0_11 = arith.constant 0 : index
    %31 = vector.load %arg3[%c0_10, %c0_11] : memref<8x128xf32, #tpu.memory_space<vmem>>, vector<8x128xf32>
    tpu.vector_store %arg3[%c0_10, %c0_11], %30 {strides = array<i32>} : memref<8x128xf32, #tpu.memory_space<vmem>>, vector<8x128xf32>,
    return
  }
  func.func @transform_0(%arg0: i32) -> (i32, i32) {
    %c0_i32 = arith.constant 0 : i32
    %c0_i32_0 = arith.constant 0 : i32
    return %arg0, %c0_i32 : i32, i32
  }
  func.func @transform_1(%arg0: i32) -> (i32, i32, i32) {
    %c0_i32 = arith.constant 0 : i32
    %c0_i32_0 = arith.constant 0 : i32
    %c0_i32_1 = arith.constant 0 : i32
    %c0_i32_2 = arith.constant 0 : i32
    return %c0_i32, %c0_i32_0, %c0_i32_1 : i32, i32, i32
  }
  func.func @transform_2(%arg0: i32) -> (i32, i32) {
    %c0_i32 = arith.constant 0 : i32
    %c0_i32_0 = arith.constant 0 : i32
    return %arg0, %c0_i32 : i32, i32
  }
}

module attributes {stable_mosaic.version = 11 : i64} {
  func.func @_onehot_gather_kernel(%arg0: i32, %arg1: memref<8x4xi32, #tpu.memory_space<vmem>>, %arg2: memref<3x64x128xbf16, #tpu.memory_space<vmem>>, %arg3: memref<8x128xf32, #tpu.memory_space<vmem>>) attributes {dimension_semantics = [#tpu.dimension_semantics<parallel>], iteration_bounds = array<i64: 1>, scalar_prefetch = 0 : i64, scratch_operands = 0 : i64, tpu.core_type = #tpu.core_type<tc>, window_params = [{transform_indices = @transform_0, window_bounds = array<i64: 8, 4>}, {pipeline_mode = #tpu.pipeline_mode<synchronous>, transform_indices = @transform_1, window_bounds = array<i64: 3, 64, 128>}, {transform_indices = @transform_2, window_bounds = array<i64: 8, 128>}]} {
    %c0 = arith.constant 0 : index
    %c0_0 = arith.constant 0 : index
    %0 = vector.load %arg1[%c0, %c0_0] : memref<8x4xi32, #tpu.memory_space<vmem>>, vector<8x4xi32>
    %1 = tpu.iota {dimensions = array<i32: 1>} : vector<8x64xi32>
    %2 = vector.extract_strided_slice %0 {offsets = [0, 0], sizes = [8, 1], strides = [1, 1]} : vector<8x4xi32> to vector<8x1xi32>
    %3 = vector.broadcast %2 : vector<8x1xi32> to vector<8x64xi32>
    %4 = arith.cmpi eq, %1, %3 : vector<8x64xi32>
    %5 = vector.extract_strided_slice %0 {offsets = [0, 1], sizes = [8, 1], strides = [1, 1]} : vector<8x4xi32> to vector<8x1xi32>
    %6 = vector.broadcast %5 : vector<8x1xi32> to vector<8x64xi32>
    %7 = arith.cmpi eq, %1, %6 : vector<8x64xi32>
    %8 = arith.ori %4, %7 : vector<8x64xi1>
    %9 = vector.extract_strided_slice %0 {offsets = [0, 2], sizes = [8, 1], strides = [1, 1]} : vector<8x4xi32> to vector<8x1xi32>
    %10 = vector.broadcast %9 : vector<8x1xi32> to vector<8x64xi32>
    %11 = arith.cmpi eq, %1, %10 : vector<8x64xi32>
    %12 = arith.ori %8, %11 : vector<8x64xi1>
    %13 = vector.extract_strided_slice %0 {offsets = [0, 3], sizes = [8, 1], strides = [1, 1]} : vector<8x4xi32> to vector<8x1xi32>
    %14 = vector.broadcast %13 : vector<8x1xi32> to vector<8x64xi32>
    %15 = arith.cmpi eq, %1, %14 : vector<8x64xi32>
    %16 = arith.ori %12, %15 : vector<8x64xi1>
    %17 = arith.extui %16 : vector<8x64xi1> to vector<8x64xi32>
    %18 = arith.sitofp %17 : vector<8x64xi32> to vector<8x64xf32>
    %19 = arith.truncf %18 : vector<8x64xf32> to vector<8x64xbf16>
    %c0_1 = arith.constant 0 : index
    %c0_2 = arith.constant 0 : index
    %c0_3 = arith.constant 0 : index
    %20 = vector.load %arg2[%c0_1, %c0_2, %c0_3] : memref<3x64x128xbf16, #tpu.memory_space<vmem>>, vector<1x64x128xbf16>
    %21 = vector.shape_cast %20 : vector<1x64x128xbf16> to vector<64x128xbf16>
    %cst = arith.constant dense<0.000000e+00> : vector<8x128xf32>
    %22 = tpu.matmul %19, %21, %cst {dimension_numbers = #tpu.dot_dimension_numbers<[1], [0], [0], [1], [0, 0, 1, 1], [], []>} : vector<8x64xbf16>, vector<64x128xbf16>, vector<8x128xf32> -> vector<8x128xf32>
    %c1 = arith.constant 1 : index
    %c0_4 = arith.constant 0 : index
    %c0_5 = arith.constant 0 : index
    %23 = vector.load %arg2[%c1, %c0_4, %c0_5] : memref<3x64x128xbf16, #tpu.memory_space<vmem>>, vector<1x64x128xbf16>
    %24 = vector.shape_cast %23 : vector<1x64x128xbf16> to vector<64x128xbf16>
    %cst_6 = arith.constant dense<0.000000e+00> : vector<8x128xf32>
    %25 = tpu.matmul %19, %24, %cst_6 {dimension_numbers = #tpu.dot_dimension_numbers<[1], [0], [0], [1], [0, 0, 1, 1], [], []>} : vector<8x64xbf16>, vector<64x128xbf16>, vector<8x128xf32> -> vector<8x128xf32>
    %26 = arith.addf %22, %25 : vector<8x128xf32>
    %c2 = arith.constant 2 : index
    %c0_7 = arith.constant 0 : index
    %c0_8 = arith.constant 0 : index
    %27 = vector.load %arg2[%c2, %c0_7, %c0_8] : memref<3x64x128xbf16, #tpu.memory_space<vmem>>, vector<1x64x128xbf16>
    %28 = vector.shape_cast %27 : vector<1x64x128xbf16> to vector<64x128xbf16>
    %cst_9 = arith.constant dense<0.000000e+00> : vector<8x128xf32>
    %29 = tpu.matmul %19, %28, %cst_9 {dimension_numbers = #tpu.dot_dimension_numbers<[1], [0], [0], [1], [0, 0, 1, 1], [], []>} : vector<8x64xbf16>, vector<64x128xbf16>, vector<8x128xf32> -> vector<8x128xf32>
    %30 = arith.addf %26, %29 : vector<8x128xf32>
    %c0_10 = arith.constant 0 : index
    %c0_11 = arith.constant 0 : index
    %31 = vector.load %arg3[%c0_10, %c0_11] : memref<8x128xf32, #tpu.memory_space<vmem>>, vector<8x128xf32>
    tpu.vector_store %arg3[%c0_10, %c0_11], %30 {strides = array<i32>} : memref<8x128xf32, #tpu.memory_space<vmem>>, vector<8x128xf32>,
    return
  }
  func.func @transform_0(%arg0: i32) -> (i32, i32) {
    %c0_i32 = arith.constant 0 : i32
    %c0_i32_0 = arith.constant 0 : i32
    return %arg0, %c0_i32 : i32, i32
  }
  func.func @transform_1(%arg0: i32) -> (i32, i32, i32) {
    %c0_i32 = arith.constant 0 : i32
    %c0_i32_0 = arith.constant 0 : i32
    %c0_i32_1 = arith.constant 0 : i32
    %c0_i32_2 = arith.constant 0 : i32
    return %c0_i32, %c0_i32_0, %c0_i32_1 : i32, i32, i32
  }
  func.func @transform_2(%arg0: i32) -> (i32, i32) {
    %c0_i32 = arith.constant 0 : i32
    %c0_i32_0 = arith.constant 0 : i32
    return %arg0, %c0_i32 : i32, i32
  }
}

</mosaic_0001>

<bundles_post_ra>
// kernel: tpu_custom_call.1
= control target key start
LH: loop header
LB: loop body
LE: loop exit
PB: predicated region body
PF: predicated region fallthrough
CT: control target
= control target key end

     0   :  { %7 = vsyncpa [#allocation3], 0  ;;  %s512_s0 = inlined_call_operand.vmem [shape: s32[8,4], index: 0, kind: input, shape index: {}]   ;;  %s513_s1 = inlined_call_operand.hbm [shape: bf16[3,64,128], index: 1, kind: input, shape index: {}]   ;;  %s514_s2 = inlined_call_operand.hbm [shape: f32[8,128], index: 2, kind: output, shape index: {}]  }
   0x1   :  { %8 = vsyncpa [#allocation4], 0  ;;  %s438_s9 = smov [#allocation2]   ;;  %s390_s13 = scalar_lea.hbm %s513_s1, 1536 }
   0x2   :  { %s16_s10 = sshll.u32 %s438_s9, 4  ;;  %p391_p0 = scmp.ne.s32.totalorder %s513_s1, %s390_s13  ;;  %s17_s10 = int_to_ptr.vmem [resolvable:$true] %s16_s10 }
   0x3   :  { %p394_p1 = scmp.lt.u32.totalorder %s390_s13, %s513_s1 }
   0x5   :  { %p396_p2 = pnand %p394_p1, %p391_p0 }
   0x7   :  { %399 = shalt.err (!%p396_p2)
}
   0x8   :  { %s400_s18 = scalar_lea.vmem %s17_s10, 1536  ;;  %p405_p4 = scmp.lt.s32.totalorder %s17_s10, %s17_s10 }
   0x9   :  { %p401_p3 = scmp.ne.s32.totalorder %s17_s10, %s400_s18  ;;  %p406_p5 = scmp.lt.s32.totalorder %s400_s18, %s400_s18 }
   0xb   :  { %p407_p6 = por %p406_p5, %p405_p4 }
   0xd   :  { %p408_p7 = pnand %p407_p6, %p401_p3 }
   0xf   :  { %411 = shalt.err (!%p408_p7)
}
  0x10   :  { %s439_s19 = smov 64   ;;  %s440_s20 = smov 4  }
  0x11   :  { %22 = dma.hbm_to_vmem [thread:$0]  %s513_s1, 1536, %s17_s10, [#allocation3], %s439_s19, %s439_s19, %s440_s20  }
  0x12   :  { %434 = dma.done.wait [#allocation3], 1536  }
  0x13   :  { %435 = vsyncadd [#allocation3], 4294965760  ;;  %v441_v0 = vmov 0   ;;  %v442_v1 = vmov 2   ;;  %v443_v2 = vmov 0.0   ;;  %v27_v3 = vld [vmem:[%s512_s0] sm:$0xff]  ;;  %v28_v14 = vlaneseq }
  0x14   :  { %373 = vset.pattern.permute.xlu0 %v441_v0  ;;  %375 = vset.pattern.permute.xlu1 %v442_v1  ;;  %v378_v4 = vld [vmem:[#allocation2] sm:$0xff]   ;;  %v380_v6 = vld [vmem:[#allocation2 + $0x8] sm:$0xff]   ;;  %v444_v8 = vmov 1   ;;  %v445_v9 = vmov 3   ;;  %v382_v10 = vld [vmem:[#allocation2 + $0x10] sm:$0xff]   ;;  %vm446_vm0 = vmmov 0  }
  0x15   :  { %334 = vmatprep.subr.bf16.mxu0 %v443_v2  ;;  %322 = vmatprep.subr.bf16.mxu1 %v443_v2  ;;  %v379_v5 = vld [vmem:[#allocation2 + $0x20] sm:$0xff]   ;;  %v381_v7 = vld [vmem:[#allocation2 + $0x28] sm:$0xff]   ;;  %v383_v11 = vld [vmem:[#allocation2 + $0x30] sm:$0xff]   ;;  %v29_v17 = vand.u32 127, %v28_v14  ;;  %vm93_vm8 = vcmask 523264   ;;  %s447_s0 = smov [#allocation5]  }
  0x16   :  { %31 = vperm.xlu0 %373, %v27_v3   ;;  %40 = vperm.xlu1 %375, %v27_v3   ;;  %v384_v12 = vld [vmem:[#allocation2 + $0x18] sm:$0xff]   ;;  %v386_v21 = vld [vmem:[#allocation2 + $0x40] sm:$0xff]   ;;  %v387_v23 = vld [vmem:[#allocation2 + $0x48] sm:$0xff]   ;;  %s282_s1 = sshll.u32 %s447_s0, 4  ;;  %s283_s1 = int_to_ptr.vmem [resolvable:$true] %s282_s1 }
  0x17   :  { %335 = vmatpush3.bf16.msra.mxu0 %v378_v4  ;;  %323 = vmatpush3.bf16.msra.mxu1 %v379_v5  ;;  %v385_v13 = vld [vmem:[#allocation2 + $0x38] sm:$0xff]   ;;  %v388_v24 = vld [vmem:[#allocation2 + $0x50] sm:$0xff]   ;;  %s412_s25 = scalar_lea.vmem %s283_s1, 128  ;;  %p417_p9 = scmp.lt.s32.totalorder %s283_s1, %s283_s1 }
  0x18   :  { %336 = vmatprep.subr.bf16.mxu0 %v443_v2  ;;  %324 = vmatprep.subr.bf16.mxu1 %v443_v2  ;;  %v389_v25 = vld [vmem:[#allocation2 + $0x58] sm:$0xff]   ;;  %p413_p8 = scmp.ne.s32.totalorder %s283_s1, %s412_s25  ;;  %p418_p10 = scmp.lt.s32.totalorder %s412_s25, %s412_s25 }
  0x19   :  { %330 = vmatprep.mubr.msk.bf16.mxu1 %vm446_vm0, %v443_v2  ;;  %342 = vmatprep.mubr.msk.bf16.mxu0 %vm446_vm0, %v443_v2 }
  0x1a   :  { %374 = vset.pattern.permute.xlu0 %v444_v8  ;;  %376 = vset.pattern.permute.xlu1 %v445_v9  ;;  %p419_p11 = por %p418_p10, %p417_p9 }
  0x1b   :  { %35 = vperm.xlu0 %374, %v27_v3   ;;  %45 = vperm.xlu1 %376, %v27_v3  }
  0x1c   :  { %337 = vmatpush3.bf16.msra.mxu0 %v380_v6  ;;  %325 = vmatpush3.bf16.msra.mxu1 %v381_v7  ;;  %p420_p12 = pnand %p419_p11, %p413_p8 }
  0x1d   :  { %338 = vmatprep.subr.bf16.mxu0 %v443_v2  ;;  %326 = vmatprep.subr.bf16.mxu1 %v443_v2 }
  0x1f   :  { %377 = vset.pattern.permute.xlu0 %v445_v9 }
  0x20   :  { %339 = vmatpush3.bf16.msra.mxu0 %v382_v10  ;;  %327 = vmatpush3.bf16.msra.mxu1 %v383_v11 }
  0x21   :  { %340 = vmatprep.subr.bf16.mxu0 %v443_v2  ;;  %328 = vmatprep.subr.bf16.mxu1 %v443_v2 }
  0x24   :  { %341 = vmatpush3.bf16.msra.mxu0 %v384_v12  ;;  %329 = vmatpush3.bf16.msra.mxu1 %v385_v13 }
  0x25   :  { %346 = vmatprep.subr.bf16.mxu0 %v443_v2 }
  0x95   :  { %v32_v15 = vpop.permute.xlu0 %31  ;;  %v41_v16 = vpop.permute.xlu1 %40 }
  0x96   :  { %vm33_vm1 = vcmp.eq.s32.totalorder %v29_v17, %v32_v15  ;;  %vm42_vm4 = vcmp.eq.s32.totalorder %v29_v17, %v41_v16 }
  0x9a   :  { %v36_v18 = vpop.permute.xlu0 %35  ;;  %v46_v19 = vpop.permute.xlu1 %45 }
  0x9b   :  { %vm37_vm2 = vcmp.eq.s32.totalorder %v29_v17, %v36_v18  ;;  %vm47_vm3 = vcmp.eq.s32.totalorder %v29_v17, %v46_v19 }
  0x9c   :  { %vm38_vm5 = vmor %vm33_vm1, %vm37_vm2 }
  0x9d   :  { %vm43_vm6 = vmor %vm38_vm5, %vm42_vm4 }
  0x9e   :  { %vm48_vm7 = vmor %vm43_vm6, %vm47_vm3 }
  0x9f   :  { %v291_v20 = vsel %vm48_vm7, 1.0, %v443_v2 }
  0xa0   :  { %v51_v22 = vpack.c.bf16 %v291_v20, %v291_v20 }
  0xa2   :  { %331 = vmatmul.mubr.msk.bf16.vlgmr.msra.gmra.mrb[0].mxu1 %vm93_vm8, %v51_v22  ;;  %343 = vmatmul.mubr.msk.bf16.vlgmr.msra.gmra.mrb[0].mxu0 %vm93_vm8, %v51_v22 }
  0xa3   :  { %347 = vmatpush3.bf16.msra.mxu0 %v386_v21  ;;  %354 = vmatprep.mubr.msk.bf16.mxu0 %vm446_vm0, %v443_v2 }
  0xa4   :  { %348 = vmatprep.subr.bf16.mxu0 %v443_v2 }
  0xa7   :  { %349 = vmatpush3.bf16.msra.mxu0 %v387_v23 }
  0xa8   :  { %350 = vmatprep.subr.bf16.mxu0 %v443_v2 }
  0xab   :  { %351 = vmatpush3.bf16.msra.mxu0 %v388_v24 }
  0xac   :  { %352 = vmatprep.subr.bf16.mxu0 %v443_v2 }
  0xaf   :  { %353 = vmatpush3.bf16.msra.mxu0 %v389_v25 }
  0xb2   :  { %355 = vmatmul.mubr.msk.bf16.vlgmr.msra.gmra.mrb[0].mxu0 %vm93_vm8, %v51_v22 }
 0x175   :  { %v131_v26 = vpop.f32.mrb[0].mxu1 }
 0x176   :  { %v332_v27 = vpop.f32.mrb[1].mxu1 }
 0x177   :  { %v134_v28 = vpop.f32.mrb[2].mxu1 }
 0x178   :  { %v333_v29 = vpop.f32.mrb[3].mxu1 }
 0x185   :  { %v268_v30 = vpop.f32.mrb[0].mxu0 }
 0x186   :  { %v358_v31 = vadd.f32 %v268_v30, %v131_v26  ;;  %v356_v32 = vpop.f32.mrb[1].mxu0 }
 0x187   :  { %v271_v33 = vpop.f32.mrb[2].mxu0 }
 0x188   :  { %275 = vst [vmem:[#allocation5] sm:$0xff] %v358_v31  ;;  %v357_v34 = vpop.f32.mrb[3].mxu0 }
 0x189   :  { %423 = shalt.err (!%p420_p12)
}
 0x18a   :  { %s424_s28 = scalar_lea.hbm %s514_s2, 128 }
 0x18b   :  { %p425_p13 = scmp.ne.s32.totalorder %s514_s2, %s424_s28  ;;  %p428_p0 = scmp.lt.u32.totalorder %s424_s28, %s514_s2 }
 0x18d   :  { %p430_p1 = pnand %p428_p0, %p425_p13 }
 0x18f   :  { %433 = shalt.err (!%p430_p1)
}
 0x190   :  { %285 = dma.vmem_to_hbm [thread:$0]  %s283_s1, 128, %s514_s2, [#allocation4]  }
 0x191   :  { %436 = dma.done.wait [#allocation4], 128  }
 0x192   :  { %437 = vsyncadd [#allocation4], 4294967168 }
 0x193   :  { %289 = vsyncpa [#allocation3], 1 }
 0x194   :  { %290 = vsyncpa [#allocation4], 1 }

// kernel: tpu_custom_call.1
= control target key start
LH: loop header
LB: loop body
LE: loop exit
PB: predicated region body
PF: predicated region fallthrough
CT: control target
= control target key end

     0   :  { %7 = vsyncpa [#allocation3], 0  ;;  %s512_s0 = inlined_call_operand.vmem [shape: s32[8,4], index: 0, kind: input, shape index: {}]   ;;  %s513_s1 = inlined_call_operand.hbm [shape: bf16[3,64,128], index: 1, kind: input, shape index: {}]   ;;  %s514_s2 = inlined_call_operand.hbm [shape: f32[8,128], index: 2, kind: output, shape index: {}]  }
   0x1   :  { %8 = vsyncpa [#allocation4], 0  ;;  %s438_s9 = smov [#allocation2]   ;;  %s390_s13 = scalar_lea.hbm %s513_s1, 1536 }
   0x2   :  { %s16_s10 = sshll.u32 %s438_s9, 4  ;;  %p391_p0 = scmp.ne.s32.totalorder %s513_s1, %s390_s13  ;;  %s17_s10 = int_to_ptr.vmem [resolvable:$true] %s16_s10 }
   0x3   :  { %p394_p1 = scmp.lt.u32.totalorder %s390_s13, %s513_s1 }
   0x5   :  { %p396_p2 = pnand %p394_p1, %p391_p0 }
   0x7   :  { %399 = shalt.err (!%p396_p2)
}
   0x8   :  { %s400_s18 = scalar_lea.vmem %s17_s10, 1536  ;;  %p405_p4 = scmp.lt.s32.totalorder %s17_s10, %s17_s10 }
   0x9   :  { %p401_p3 = scmp.ne.s32.totalorder %s17_s10, %s400_s18  ;;  %p406_p5 = scmp.lt.s32.totalorder %s400_s18, %s400_s18 }
   0xb   :  { %p407_p6 = por %p406_p5, %p405_p4 }
   0xd   :  { %p408_p7 = pnand %p407_p6, %p401_p3 }
   0xf   :  { %411 = shalt.err (!%p408_p7)
}
  0x10   :  { %s439_s19 = smov 64   ;;  %s440_s20 = smov 4  }
  0x11   :  { %22 = dma.hbm_to_vmem [thread:$0]  %s513_s1, 1536, %s17_s10, [#allocation3], %s439_s19, %s439_s19, %s440_s20  }
  0x12   :  { %434 = dma.done.wait [#allocation3], 1536  }
  0x13   :  { %435 = vsyncadd [#allocation3], 4294965760  ;;  %v441_v0 = vmov 0   ;;  %v442_v1 = vmov 2   ;;  %v443_v2 = vmov 0.0   ;;  %v27_v3 = vld [vmem:[%s512_s0] sm:$0xff]  ;;  %v28_v14 = vlaneseq }
  0x14   :  { %373 = vset.pattern.permute.xlu0 %v441_v0  ;;  %375 = vset.pattern.permute.xlu1 %v442_v1  ;;  %v378_v4 = vld [vmem:[#allocation2] sm:$0xff]   ;;  %v380_v6 = vld [vmem:[#allocation2 + $0x8] sm:$0xff]   ;;  %v444_v8 = vmov 1   ;;  %v445_v9 = vmov 3   ;;  %v382_v10 = vld [vmem:[#allocation2 + $0x10] sm:$0xff]   ;;  %vm446_vm0 = vmmov 0  }
  0x15   :  { %334 = vmatprep.subr.bf16.mxu0 %v443_v2  ;;  %322 = vmatprep.subr.bf16.mxu1 %v443_v2  ;;  %v379_v5 = vld [vmem:[#allocation2 + $0x20] sm:$0xff]   ;;  %v381_v7 = vld [vmem:[#allocation2 + $0x28] sm:$0xff]   ;;  %v383_v11 = vld [vmem:[#allocation2 + $0x30] sm:$0xff]   ;;  %v29_v17 = vand.u32 127, %v28_v14  ;;  %vm93_vm8 = vcmask 523264   ;;  %s447_s0 = smov [#allocation5]  }
  0x16   :  { %31 = vperm.xlu0 %373, %v27_v3   ;;  %40 = vperm.xlu1 %375, %v27_v3   ;;  %v384_v12 = vld [vmem:[#allocation2 + $0x18] sm:$0xff]   ;;  %v386_v21 = vld [vmem:[#allocation2 + $0x40] sm:$0xff]   ;;  %v387_v23 = vld [vmem:[#allocation2 + $0x48] sm:$0xff]   ;;  %s282_s1 = sshll.u32 %s447_s0, 4  ;;  %s283_s1 = int_to_ptr.vmem [resolvable:$true] %s282_s1 }
  0x17   :  { %335 = vmatpush3.bf16.msra.mxu0 %v378_v4  ;;  %323 = vmatpush3.bf16.msra.mxu1 %v379_v5  ;;  %v385_v13 = vld [vmem:[#allocation2 + $0x38] sm:$0xff]   ;;  %v388_v24 = vld [vmem:[#allocation2 + $0x50] sm:$0xff]   ;;  %s412_s25 = scalar_lea.vmem %s283_s1, 128  ;;  %p417_p9 = scmp.lt.s32.totalorder %s283_s1, %s283_s1 }
  0x18   :  { %336 = vmatprep.subr.bf16.mxu0 %v443_v2  ;;  %324 = vmatprep.subr.bf16.mxu1 %v443_v2  ;;  %v389_v25 = vld [vmem:[#allocation2 + $0x58] sm:$0xff]   ;;  %p413_p8 = scmp.ne.s32.totalorder %s283_s1, %s412_s25  ;;  %p418_p10 = scmp.lt.s32.totalorder %s412_s25, %s412_s25 }
  0x19   :  { %330 = vmatprep.mubr.msk.bf16.mxu1 %vm446_vm0, %v443_v2  ;;  %342 = vmatprep.mubr.msk.bf16.mxu0 %vm446_vm0, %v443_v2 }
  0x1a   :  { %374 = vset.pattern.permute.xlu0 %v444_v8  ;;  %376 = vset.pattern.permute.xlu1 %v445_v9  ;;  %p419_p11 = por %p418_p10, %p417_p9 }
  0x1b   :  { %35 = vperm.xlu0 %374, %v27_v3   ;;  %45 = vperm.xlu1 %376, %v27_v3  }
  0x1c   :  { %337 = vmatpush3.bf16.msra.mxu0 %v380_v6  ;;  %325 = vmatpush3.bf16.msra.mxu1 %v381_v7  ;;  %p420_p12 = pnand %p419_p11, %p413_p8 }
  0x1d   :  { %338 = vmatprep.subr.bf16.mxu0 %v443_v2  ;;  %326 = vmatprep.subr.bf16.mxu1 %v443_v2 }
  0x1f   :  { %377 = vset.pattern.permute.xlu0 %v445_v9 }
  0x20   :  { %339 = vmatpush3.bf16.msra.mxu0 %v382_v10  ;;  %327 = vmatpush3.bf16.msra.mxu1 %v383_v11 }
  0x21   :  { %340 = vmatprep.subr.bf16.mxu0 %v443_v2  ;;  %328 = vmatprep.subr.bf16.mxu1 %v443_v2 }
  0x24   :  { %341 = vmatpush3.bf16.msra.mxu0 %v384_v12  ;;  %329 = vmatpush3.bf16.msra.mxu1 %v385_v13 }
  0x25   :  { %346 = vmatprep.subr.bf16.mxu0 %v443_v2 }
  0x95   :  { %v32_v15 = vpop.permute.xlu0 %31  ;;  %v41_v16 = vpop.permute.xlu1 %40 }
  0x96   :  { %vm33_vm1 = vcmp.eq.s32.totalorder %v29_v17, %v32_v15  ;;  %vm42_vm4 = vcmp.eq.s32.totalorder %v29_v17, %v41_v16 }
  0x9a   :  { %v36_v18 = vpop.permute.xlu0 %35  ;;  %v46_v19 = vpop.permute.xlu1 %45 }
  0x9b   :  { %vm37_vm2 = vcmp.eq.s32.totalorder %v29_v17, %v36_v18  ;;  %vm47_vm3 = vcmp.eq.s32.totalorder %v29_v17, %v46_v19 }
  0x9c   :  { %vm38_vm5 = vmor %vm33_vm1, %vm37_vm2 }
  0x9d   :  { %vm43_vm6 = vmor %vm38_vm5, %vm42_vm4 }
  0x9e   :  { %vm48_vm7 = vmor %vm43_vm6, %vm47_vm3 }
  0x9f   :  { %v291_v20 = vsel %vm48_vm7, 1.0, %v443_v2 }
  0xa0   :  { %v51_v22 = vpack.c.bf16 %v291_v20, %v291_v20 }
  0xa2   :  { %331 = vmatmul.mubr.msk.bf16.vlgmr.msra.gmra.mrb[0].mxu1 %vm93_vm8, %v51_v22  ;;  %343 = vmatmul.mubr.msk.bf16.vlgmr.msra.gmra.mrb[0].mxu0 %vm93_vm8, %v51_v22 }
  0xa3   :  { %347 = vmatpush3.bf16.msra.mxu0 %v386_v21  ;;  %354 = vmatprep.mubr.msk.bf16.mxu0 %vm446_vm0, %v443_v2 }
  0xa4   :  { %348 = vmatprep.subr.bf16.mxu0 %v443_v2 }
  0xa7   :  { %349 = vmatpush3.bf16.msra.mxu0 %v387_v23 }
  0xa8   :  { %350 = vmatprep.subr.bf16.mxu0 %v443_v2 }
  0xab   :  { %351 = vmatpush3.bf16.msra.mxu0 %v388_v24 }
  0xac   :  { %352 = vmatprep.subr.bf16.mxu0 %v443_v2 }
  0xaf   :  { %353 = vmatpush3.bf16.msra.mxu0 %v389_v25 }
  0xb2   :  { %355 = vmatmul.mubr.msk.bf16.vlgmr.msra.gmra.mrb[0].mxu0 %vm93_vm8, %v51_v22 }
 0x175   :  { %v131_v26 = vpop.f32.mrb[0].mxu1 }
 0x176   :  { %v332_v27 = vpop.f32.mrb[1].mxu1 }
 0x177   :  { %v134_v28 = vpop.f32.mrb[2].mxu1 }
 0x178   :  { %v333_v29 = vpop.f32.mrb[3].mxu1 }
 0x185   :  { %v268_v30 = vpop.f32.mrb[0].mxu0 }
 0x186   :  { %v358_v31 = vadd.f32 %v268_v30, %v131_v26  ;;  %v356_v32 = vpop.f32.mrb[1].mxu0 }
 0x187   :  { %v271_v33 = vpop.f32.mrb[2].mxu0 }
 0x188   :  { %275 = vst [vmem:[#allocation5] sm:$0xff] %v358_v31  ;;  %v357_v34 = vpop.f32.mrb[3].mxu0 }
 0x189   :  { %423 = shalt.err (!%p420_p12)
}
 0x18a   :  { %s424_s28 = scalar_lea.hbm %s514_s2, 128 }
 0x18b   :  { %p425_p13 = scmp.ne.s32.totalorder %s514_s2, %s424_s28  ;;  %p428_p0 = scmp.lt.u32.totalorder %s424_s28, %s514_s2 }
 0x18d   :  { %p430_p1 = pnand %p428_p0, %p425_p13 }
 0x18f   :  { %433 = shalt.err (!%p430_p1)
}
 0x190   :  { %285 = dma.vmem_to_hbm [thread:$0]  %s283_s1, 128, %s514_s2, [#allocation4]  }
 0x191   :  { %436 = dma.done.wait [#allocation4], 128  }
 0x192   :  { %437 = vsyncadd [#allocation4], 4294967168 }
 0x193   :  { %289 = vsyncpa [#allocation3], 1 }
 0x194   :  { %290 = vsyncpa [#allocation4], 1 }

</bundles_post_ra>
